<compile_context>
chip_gen: v7x
topology: tpu7x:2x2x1
jax: 0.10.0
libtpu: 0.0.40
codegen_flags: <defaults>
</compile_context>

<pallas_src>
import jax
import jax.numpy as jnp
from jax.experimental import pallas as pl
from jax.experimental.pallas import tpu as pltpu

LANE = 128        # TPU lane width
SUB = 512         # lanes per inner compute sub-chunk (bounds vreg live range)
MAX_TILE = 8192   # batch-tile upper bound (per-step DMA ~48 KiB, overhead amortized)


def net_kernel(x_ref, w1_ref, w2_ref, w3_ref, o_ref):
    # x: [2, TB] bf16, w1: [10, 2], w2: [50, 10], w3: [4, 50] (bf16) -> o: [4, TB] bf16
    tb = x_ref.shape[1]
    sub = min(SUB, tb)
    num_sub = tb // sub          # tb is always a multiple of sub (see _choose_tile)

    w2 = w2_ref[...]             # [50, 10] bf16, VMEM-resident
    w3 = w3_ref[...]             # [4, 50]  bf16
    # Hoist the two broadcasted fc1 weight columns out of the chunk loop.
    w1 = w1_ref[...]             # [10, 2]  bf16
    w1c0 = w1[:, 0:1]            # [10, 1]
    w1c1 = w1[:, 1:2]            # [10, 1]

    def chunk(j, carry):
        off = pl.multiple_of(j * sub, sub)
        x = x_ref[:, pl.ds(off, sub)]                                  # [2, sub] bf16

        # Layer 1 (K=2): two broadcast FMAs on the VPU, packed bf16.
        h1 = jnp.maximum(w1c0 * x[0:1, :] + w1c1 * x[1:2, :], 0.0)     # [10, sub] bf16

        # Layer 2: bf16 MXU matmul, f32 accumulation, then ReLU in packed bf16
        # (relu o cast == cast o relu).
        h2 = jnp.dot(w2, h1, preferred_element_type=jnp.float32)       # [50, sub] f32
        h2 = jnp.maximum(h2.astype(jnp.bfloat16), 0.0)                 # [50, sub] bf16

        # Layer 3: bf16 MXU matmul, logits kept in f32 for the softmax epilogue.
        logits = jnp.dot(w3, h2, preferred_element_type=jnp.float32)   # [4, sub] f32

        # Numerically stable softmax over the class axis (axis 0 in this layout).
        # Exact divide: every column sums to 1 to f32 precision; the only
        # remaining row-sum error is the final bf16 store quantization.
        m = jnp.max(logits, axis=0, keepdims=True)                     # [1, sub]
        e = jnp.exp(logits - m)
        denom = jnp.sum(e, axis=0, keepdims=True)
        o_ref[:, pl.ds(off, sub)] = (e / denom).astype(o_ref.dtype)
        return carry

    # Unrolled sub-chunk loop keeps the [50, sub] intermediates' live range
    # bounded (~<40 vregs) while the DMA tile stays large.
    jax.lax.fori_loop(0, num_sub, chunk, 0, unroll=True)


def _choose_tile(n):
    """Pick (batch_tile, padded_batch) for a logical batch of n examples."""
    n_lanes = -(-n // LANE) * LANE
    # Prefer >= 2 grid steps when there is more than one lane-group of work so
    # the "parallel" batch axis can shard across both TensorCores on v7x
    # (harmless no-op on 1-TC v5e/v6e).
    half = (n_lanes // 2) // LANE * LANE
    tb = min(MAX_TILE, max(LANE, half))
    if tb > SUB:
        tb = (tb // SUB) * SUB           # keep the tile a multiple of the inner chunk
    n_pad = -(-n_lanes // tb) * tb       # pad batch UP to the tile; never shrink the tile
    return tb, n_pad


def _forward_lanes(xt, w1b, w2b, w3b, tb):
    """Native-layout entry: xt [2, n_pad] bf16 (n_pad % tb == 0) -> [4, n_pad] bf16.

    Callers that can keep activations in this [feature, batch] layout end to end
    should call this directly and skip the transpose/pad round trips below.
    """
    n_pad = xt.shape[1]
    cost = pl.CostEstimate(
        flops=1440 * n_pad,                              # 2*(10*2 + 50*10 + 4*50) per element
        transcendentals=4 * n_pad,                       # softmax exp
        bytes_accessed=(2 + 4) * 2 * n_pad + 2 * (20 + 500 + 200),
    )
    return pl.pallas_call(
        net_kernel,
        out_shape=jax.ShapeDtypeStruct((4, n_pad), jnp.bfloat16),
        grid=(n_pad // tb,),
        in_specs=[
            pl.BlockSpec((2, tb), lambda i: (0, i)),       # stream x tiles over the batch
            pl.BlockSpec(w1b.shape, lambda i: (0, 0)),     # tiny weights stay VMEM-resident
            pl.BlockSpec(w2b.shape, lambda i: (0, 0)),
            pl.BlockSpec(w3b.shape, lambda i: (0, 0)),
        ],
        out_specs=pl.BlockSpec((4, tb), lambda i: (0, i)),  # lane-dense bf16 stores
        compiler_params=pltpu.CompilerParams(
            dimension_semantics=("parallel",)),            # shard batch tiles across TCs on v7x
        cost_estimate=cost,
    )(xt, w1b, w2b, w3b)


def _net_forward(x, w1, w2, w3):
    """Torch-layout convenience wrapper.

    x: [N, 2] f32; w1/w2/w3 in PyTorch (out, in) layout: [10,2], [50,10], [4,50].
    Returns softmax probabilities [N, 4] f32 (matching the torch module's output).

    NOTE: the pad/cast/transpose here are wrapper-side HBM round trips; callers
    that can keep the [2, N] / [4, N] lane-major layout should use _forward_lanes.
    """
    n = x.shape[0]
    tb, n_pad = _choose_tile(n)
    xt = jnp.pad(x.astype(jnp.bfloat16).T, ((0, 0), (0, n_pad - n)))   # [2, n_pad] bf16
    out_t = _forward_lanes(xt, w1.astype(jnp.bfloat16), w2.astype(jnp.bfloat16),
                           w3.astype(jnp.bfloat16), tb)
    # Slice off padding, back to [N, 4]; the f32 cast touches only 4*N values.
    return out_t[:, :n].T.astype(jnp.float32)


net_forward = jax.jit(_net_forward)


def init_linear_weight(key, out_features, in_features):
    # Mimic PyTorch nn.Linear default init: U(-1/sqrt(in), 1/sqrt(in)), stored as (out, in).
    bound = 1.0 / jnp.sqrt(jnp.float32(in_features))
    return jax.random.uniform(
        key, (out_features, in_features), dtype=jnp.float32, minval=-bound, maxval=bound
    )


def reference_forward(x, w1, w2, w3):
    # Pure-JAX f32 reference (weights in PyTorch (out, in) layout).
    h1 = jnp.maximum(x @ w1.T, 0.0)
    h2 = jnp.maximum(h1 @ w2.T, 0.0)
    logits = h2 @ w3.T
    return jax.nn.softmax(logits, axis=1)


def _check(out, ref):
    outf = out.astype(jnp.float32)
    assert jnp.allclose(outf, ref, atol=2e-2, rtol=2e-2)              # bf16 operands/output
    # Exact softmax divide -> row sums are 1.0 up to bf16 output quantization (<= ~2**-9).
    assert jnp.allclose(jnp.sum(outf, axis=1), 1.0, atol=5e-3)


if __name__ == "__main__":
    key = jax.random.PRNGKey(0)
    kx, k1, k2, k3 = jax.random.split(key, 4)

    # Weights in PyTorch layout (out, in), deterministic init.
    w1 = init_linear_weight(k1, 10, 2)
    w2 = init_linear_weight(k2, 50, 10)
    w3 = init_linear_weight(k3, 4, 50)

    # TODO(synk): cross-device placement (.to(gpus[i])) and the unused no_grad_param
    # buffer have no kernel-level equivalent; the math of forward() is fully covered.

    # Small batch: single 128-lane tile.
    batch = 8
    x = jax.random.normal(kx, (batch, 2), dtype=jnp.float32)
    out = jax.block_until_ready(net_forward(x, w1, w2, w3))
    assert out.shape == (batch, 4)
    _check(out, reference_forward(x, w1, w2, w3))

    # Padded multi-tile grid path (300 -> pad 384 -> 3 tiles of 128).
    batch2 = 300
    x2 = jax.random.normal(kx, (batch2, 2), dtype=jnp.float32)
    out2 = jax.block_until_ready(net_forward(x2, w1, w2, w3))
    assert out2.shape == (batch2, 4)
    _check(out2, reference_forward(x2, w1, w2, w3))

    # Larger batch: 1024-lane tiles, 2 grid steps, 2 unrolled 512-lane sub-chunks.
    batch3 = 2000
    x3 = jax.random.normal(kx, (batch3, 2), dtype=jnp.float32)
    out3 = jax.block_until_ready(net_forward(x3, w1, w2, w3))
    assert out3.shape == (batch3, 4)
    _check(out3, reference_forward(x3, w1, w2, w3))

    print("KERNEL_OK")
</pallas_src>

<mosaic_0001>
module attributes {stable_mosaic.version = 11 : i64} {
  func.func @net_kernel(%arg0: i32, %arg1: memref<2x128xbf16, #tpu.memory_space<vmem>>, %arg2: memref<10x2xbf16, #tpu.memory_space<vmem>>, %arg3: memref<50x10xbf16, #tpu.memory_space<vmem>>, %arg4: memref<4x50xbf16, #tpu.memory_space<vmem>>, %arg5: memref<4x128xbf16, #tpu.memory_space<vmem>>) attributes {dimension_semantics = [#tpu.dimension_semantics<parallel>], iteration_bounds = array<i64: 1>, scalar_prefetch = 0 : i64, scratch_operands = 0 : i64, tpu.core_type = #tpu.core_type<tc>, window_params = [{transform_indices = @transform_0, window_bounds = array<i64: 2, 128>}, {pipeline_mode = #tpu.pipeline_mode<synchronous>, transform_indices = @transform_1, window_bounds = array<i64: 10, 2>}, {pipeline_mode = #tpu.pipeline_mode<synchronous>, transform_indices = @transform_2, window_bounds = array<i64: 50, 10>}, {pipeline_mode = #tpu.pipeline_mode<synchronous>, transform_indices = @transform_3, window_bounds = array<i64: 4, 50>}, {transform_indices = @transform_4, window_bounds = array<i64: 4, 128>}]} {
    %c0 = arith.constant 0 : index
    %c0_0 = arith.constant 0 : index
    %0 = vector.load %arg3[%c0, %c0_0] : memref<50x10xbf16, #tpu.memory_space<vmem>>, vector<50x10xbf16>
    %c0_1 = arith.constant 0 : index
    %c0_2 = arith.constant 0 : index
    %1 = vector.load %arg4[%c0_1, %c0_2] : memref<4x50xbf16, #tpu.memory_space<vmem>>, vector<4x50xbf16>
    %c0_3 = arith.constant 0 : index
    %c0_4 = arith.constant 0 : index
    %2 = vector.load %arg2[%c0_3, %c0_4] : memref<10x2xbf16, #tpu.memory_space<vmem>>, vector<10x2xbf16>
    %3 = vector.extract_strided_slice %2 {offsets = [0, 0], sizes = [10, 1], strides = [1, 1]} : vector<10x2xbf16> to vector<10x1xbf16>
    %4 = vector.extract_strided_slice %2 {offsets = [0, 1], sizes = [10, 1], strides = [1, 1]} : vector<10x2xbf16> to vector<10x1xbf16>
    %c0_i32 = arith.constant 0 : i32
    %c128_i32 = arith.constant 128 : i32
    %5 = arith.muli %c0_i32, %c128_i32 : i32
    %6 = tpu.assume_multiple %5, 128 : i32
    %c0_5 = arith.constant 0 : index
    %7 = arith.index_cast %6 : i32 to index
    %8 = vector.load %arg1[%c0_5, %7] : memref<2x128xbf16, #tpu.memory_space<vmem>>, vector<2x128xbf16>
    %9 = vector.extract_strided_slice %8 {offsets = [0, 0], sizes = [1, 128], strides = [1, 1]} : vector<2x128xbf16> to vector<1x128xbf16>
    %10 = vector.broadcast %3 : vector<10x1xbf16> to vector<10x128xbf16>
    %11 = vector.broadcast %9 : vector<1x128xbf16> to vector<10x128xbf16>
    %12 = arith.mulf %10, %11 : vector<10x128xbf16>
    %13 = vector.extract_strided_slice %8 {offsets = [1, 0], sizes = [1, 128], strides = [1, 1]} : vector<2x128xbf16> to vector<1x128xbf16>
    %14 = vector.broadcast %4 : vector<10x1xbf16> to vector<10x128xbf16>
    %15 = vector.broadcast %13 : vector<1x128xbf16> to vector<10x128xbf16>
    %16 = arith.mulf %14, %15 : vector<10x128xbf16>
    %17 = arith.addf %12, %16 : vector<10x128xbf16>
    %cst = arith.constant 0.000000e+00 : bf16
    %18 = vector.broadcast %cst : bf16 to vector<10x128xbf16>
    %19 = arith.maximumf %17, %18 : vector<10x128xbf16>
    %cst_6 = arith.constant dense<0.000000e+00> : vector<50x128xf32>
    %20 = tpu.matmul %0, %19, %cst_6 {dimension_numbers = #tpu.dot_dimension_numbers<[1], [0], [0], [1], [0, 0, 1, 1], [], []>} : vector<50x10xbf16>, vector<10x128xbf16>, vector<50x128xf32> -> vector<50x128xf32>
    %21 = arith.truncf %20 : vector<50x128xf32> to vector<50x128xbf16>
    %cst_7 = arith.constant 0.000000e+00 : bf16
    %22 = vector.broadcast %cst_7 : bf16 to vector<50x128xbf16>
    %23 = arith.maximumf %21, %22 : vector<50x128xbf16>
    %cst_8 = arith.constant dense<0.000000e+00> : vector<4x128xf32>
    %24 = tpu.matmul %1, %23, %cst_8 {dimension_numbers = #tpu.dot_dimension_numbers<[1], [0], [0], [1], [0, 0, 1, 1], [], []>} : vector<4x50xbf16>, vector<50x128xbf16>, vector<4x128xf32> -> vector<4x128xf32>
    %cst_9 = arith.constant dense<0xFF800000> : vector<128xf32>
    %25 = vector.multi_reduction <maximumf>, %24, %cst_9 [0] : vector<4x128xf32> to vector<128xf32>
    %26 = vector.shape_cast %25 : vector<128xf32> to vector<1x128xf32>
    %27 = vector.broadcast %26 : vector<1x128xf32> to vector<4x128xf32>
    %28 = arith.subf %24, %27 : vector<4x128xf32>
    %29 = math.exp %28 : vector<4x128xf32>
    %cst_10 = arith.constant dense<0.000000e+00> : vector<128xf32>
    %30 = vector.multi_reduction <add>, %29, %cst_10 [0] : vector<4x128xf32> to vector<128xf32>
    %31 = vector.shape_cast %30 : vector<128xf32> to vector<1x128xf32>
    %32 = vector.broadcast %31 : vector<1x128xf32> to vector<4x128xf32>
    %33 = arith.divf %29, %32 : vector<4x128xf32>
    %34 = arith.truncf %33 : vector<4x128xf32> to vector<4x128xbf16>
    %c0_11 = arith.constant 0 : index
    %35 = arith.index_cast %6 : i32 to index
    %36 = vector.load %arg5[%c0_11, %35] : memref<4x128xbf16, #tpu.memory_space<vmem>>, vector<4x128xbf16>
    tpu.vector_store %arg5[%c0_11, %35], %34 {strides = array<i32>} : memref<4x128xbf16, #tpu.memory_space<vmem>>, vector<4x128xbf16>,
    %c1_i32 = arith.constant 1 : i32
    return
  }
  func.func @transform_0(%arg0: i32) -> (i32, i32) {
    %c0_i32 = arith.constant 0 : i32
    %c0_i32_0 = arith.constant 0 : i32
    return %c0_i32, %arg0 : i32, i32
  }
  func.func @transform_1(%arg0: i32) -> (i32, i32) {
    %c0_i32 = arith.constant 0 : i32
    %c0_i32_0 = arith.constant 0 : i32
    %c0_i32_1 = arith.constant 0 : i32
    return %c0_i32, %c0_i32_0 : i32, i32
  }
  func.func @transform_2(%arg0: i32) -> (i32, i32) {
    %c0_i32 = arith.constant 0 : i32
    %c0_i32_0 = arith.constant 0 : i32
    %c0_i32_1 = arith.constant 0 : i32
    return %c0_i32, %c0_i32_0 : i32, i32
  }
  func.func @transform_3(%arg0: i32) -> (i32, i32) {
    %c0_i32 = arith.constant 0 : i32
    %c0_i32_0 = arith.constant 0 : i32
    %c0_i32_1 = arith.constant 0 : i32
    return %c0_i32, %c0_i32_0 : i32, i32
  }
  func.func @transform_4(%arg0: i32) -> (i32, i32) {
    %c0_i32 = arith.constant 0 : i32
    %c0_i32_0 = arith.constant 0 : i32
    return %c0_i32, %arg0 : i32, i32
  }
}

</mosaic_0001>

<bundles_post_ra>
// kernel: _net_forward.1
= control target key start
LH: loop header
LB: loop body
LE: loop exit
PB: predicated region body
PF: predicated region fallthrough
CT: control target
= control target key end

     0   :  { %v352_v0 = vmov 1   ;;  %v353_v1 = vmov 0   ;;  %vm128_vm0 = vcmask 80896   ;;  %v37_v5 = vlaneseq  ;;  %s422_s1 = inlined_call_operand.vmem [shape: bf16[10,2], index: 1, kind: input, shape index: {}]   ;;  %s423_s2 = inlined_call_operand.vmem [shape: bf16[50,10], index: 2, kind: input, shape index: {}]   ;;  %s424_s0 = inlined_call_operand.vmem [shape: bf16[2,128], index: 0, kind: input, shape index: {}]   ;;  %s425_s3 = inlined_call_operand.vmem [shape: bf16[4,50], index: 3, kind: input, shape index: {}]   ;;  %s426_s4 = inlined_call_operand.vmem [shape: bf16[4,128], index: 4, kind: output, shape index: {}]  }
   0x1   :  { %342 = vset.pattern.permute.xlu1 %v352_v0  ;;  %341 = vset.pattern.permute.xlu0 %v353_v1  ;;  %v26_v2 = vld [vmem:[%s422_s1] sm:$0xf]  ;;  %v27_v3 = vld [vmem:[%s422_s1 + $0x4] sm:$0x1]  ;;  %v354_v9 = vmov 839922192  }
   0x2   :  { %67 = vperm.xlu1 %342, %v26_v2   ;;  %31 = vperm.xlu0 %341, %v26_v2   ;;  %v344_v4 = vld [vmem:[%s423_s2] sm:$0xff]   ;;  %v38_v7 = vshrl.u32 %v37_v5, 7  ;;  %v35_v10 = vunpack.c.l.s4 %v354_v9  ;;  %vm141_vm1 = vcmask 1044480   ;;  %v345_v38 = vld [vmem:[%s423_s2 + $0x8] sm:$0xff]   ;;  %v346_v39 = vld [vmem:[%s423_s2 + $0x10] sm:$0xff]   ;;  %v355_v41 = vmov 0.0  }
   0x3   :  { %315 = vmatprep.mubr.msk.bf16.mxu0 %vm128_vm0, %v344_v4  ;;  %v28_v6 = vld [vmem:[%s424_s0] sm:$0x1]  ;;  %v347_v40 = vld [vmem:[%s423_s2 + $0x18] ss:$0 sps:$4 sm:$0x11]   ;;  %323 = vmatprep.subr.bf16.mxu1 %v355_v41  ;;  %vm356_vm2 = vmmov 0  }
   0x4   :  { %v88_v8 = vshrl.u32 %v28_v6, 16  ;;  %v58_v11 = vsub.s32 0, %v38_v7  ;;  %v54_v13 = vpack.i.b16 %v28_v6, %v28_v6  ;;  %v36_v14 = vunpack.c.0.s8 %v35_v10  ;;  %331 = vmatprep.mubr.msk.bf16.mxu1 %vm356_vm2, %v355_v41  ;;  %v25_v59 = vld [vmem:[%s425_s3] sm:$0x3] }
   0x5   :  { %vm221_vm3 = vcmask 1040384   ;;  %vm217_vm4 = vcmask 408576   ;;  %vm265_vm5 = vcmask 1043456  }
   0x6   :  { %78 = vperm.xlu1 %342, %v27_v3   ;;  %43 = vperm.xlu0 %341, %v27_v3   ;;  %v89_v12 = vpack.i.b16 %v88_v8, %v88_v8  ;;  %v59_v16 = vrot.slane %v54_v13, %v58_v11  ;;  %v39_v17 = vsub.s32 %v36_v14, %v38_v7 }
   0x8   :  { %v94_v15 = vrot.slane %v89_v12, %v58_v11  ;;  %v291_v19 = vcombine.low %v59_v16, %v59_v16 }
   0xa   :  { %343 = vset.pattern.permute.xlu0 %v352_v0  ;;  %v292_v18 = vcombine.low %v94_v15, %v94_v15 }
  0x81   :  { %v68_v20 = vpop.permute.xlu1 %67  ;;  %v32_v21 = vpop.permute.xlu0 %31 }
  0x82   :  { %v76_v22 = vrot.slane %v68_v20, %v39_v17  ;;  %v40_v23 = vrot.slane %v32_v21, %v39_v17 }
  0x84   :  { %v99_v24 = vmul.bf16 %v292_v18, %v76_v22  ;;  %v64_v25 = vmul.bf16 %v291_v19, %v40_v23 }
  0x85   :  { %v79_v26 = vpop.permute.xlu1 %78  ;;  %v44_v27 = vpop.permute.xlu0 %43 }
  0x86   :  { %v87_v28 = vrot.slane %v79_v26, %v39_v17  ;;  %v52_v29 = vrot.slane %v44_v27, %v39_v17  ;;  %v101_v30 = vadd.bf16 %v99_v24, %v64_v25 }
  0x88   :  { %v100_v31 = vmul.bf16 %v292_v18, %v87_v28  ;;  %v65_v32 = vmul.bf16 %v291_v19, %v52_v29  ;;  %v103_v34 = vmax.bf16 %v353_v1, %v101_v30 }
  0x8a   :  { %v102_v33 = vadd.bf16 %v100_v31, %v65_v32 }
  0x8c   :  { %v104_v35 = vmax.bf16 %v353_v1, %v102_v33 }
  0x8e   :  { %v297_v36 = vcombine.low %v103_v34, %v104_v35 }
  0x90   :  { %335 = vmatprep.subr.msk.bf16.mxu0 %vm141_vm1, %v297_v36  ;;  %v143_v37 = vsel %vm141_vm1, %v297_v36, 0 }
  0x91   :  { %314 = vmatpush3.bf16.msra.mxu0 %v143_v37 }
  0x94   :  { %316 = vmatmul.mubr.msk.bf16.vlgmr.msra.gmra.mrb[0].mxu0 %vm128_vm0, %v345_v38 }
  0x95   :  { %319 = vmatprep.mubr.msk.bf16.mxu0 %vm128_vm0, %v346_v39 }
  0x9c   :  { %320 = vmatmul.mubr.msk.bf16.gmra.mrb[4].mxu0 %vm128_vm0, %v347_v40 }
 0x167   :  { %v317_v42 = vpop.f32.mrb[0].mxu0 }
 0x168   :  { %v179_v43 = vpop.f32.mrb[1].mxu0 }
 0x169   :  { %v318_v44 = vpop.f32.mrb[2].mxu0 }
 0x16a   :  { %v210_v45 = vpack.c.bf16 %v318_v44, %v317_v42  ;;  %v182_v46 = vpop.f32.mrb[3].mxu0 }
 0x16b   :  { %v209_v47 = vpack.c.bf16 %v182_v46, %v179_v43 }
 0x16c   :  { %v214_v51 = vmax.bf16 %v353_v1, %v210_v45 }
 0x16d   :  { %v213_v48 = vmax.bf16 %v353_v1, %v209_v47 }
 0x16f   :  { %v321_v49 = vpop.f32.mrb[4].mxu0  ;;  %324 = vmatpush3.bf16.msra.mxu1 %v213_v48 }
 0x170   :  { %v195_v50 = vpop.f32.mrb[5].mxu0  ;;  %325 = vmatprep.subr.bf16.mxu1 %v355_v41  ;;  %v212_v53 = vpack.c.bf16 %v321_v49, %v321_v49 }
 0x171   :  { %v322_v52 = vpop.f32.mrb[6].mxu0 }
 0x172   :  { %v198_v54 = vpop.f32.mrb[7].mxu0  ;;  %v216_v57 = vmax.bf16 %v353_v1, %v212_v53 }
 0x173   :  { %v211_v55 = vpack.c.bf16 %v198_v54, %v195_v50  ;;  %326 = vmatpush3.bf16.msra.mxu1 %v214_v51 }
 0x174   :  { %327 = vmatprep.subr.bf16.mxu1 %v355_v41  ;;  %v223_v58 = vsel %vm221_vm3, %v216_v57, 0 }
 0x175   :  { %v215_v56 = vmax.bf16 %v353_v1, %v211_v55 }
 0x177   :  { %328 = vmatpush3.bf16.msra.mxu1 %v215_v56 }
 0x178   :  { %329 = vmatprep.subr.bf16.mxu1 %v355_v41 }
 0x17b   :  { %330 = vmatpush3.bf16.msra.mxu1 %v223_v58 }
 0x17e   :  { %332 = vmatmul.mubr.msk.bf16.vlgmr.msra.gmra.mrb[0].mxu1 %vm217_vm4, %v25_v59 }
 0x251   :  { %v259_v60 = vpop.f32.mrb[0].mxu1 }
 0x252   :  { %v266_v61 = vsel %vm265_vm5, %v259_v60, -inf  ;;  %v333_v62 = vpop.f32.mrb[1].mxu1 }
 0x253   :  { %v267_v63 = vrot.slane %v266_v61, 4  ;;  %v262_v0 = vpop.f32.mrb[2].mxu1 }
 0x254   :  { %v334_v2 = vpop.f32.mrb[3].mxu1 }
 0x255   :  { %v268_v1 = vmax.f32 %v266_v61, %v267_v63 }
 0x257   :  { %v269_v3 = vrot.slane %v268_v1, 2 }
 0x259   :  { %v270_v4 = vmax.f32 %v268_v1, %v269_v3 }
 0x25b   :  { %v271_v5 = vrot.slane %v270_v4, 1 }
 0x25d   :  { %v272_v6 = vmax.f32 %v270_v4, %v271_v5 }
 0x25f   :  { %v273_v7 = vsub.f32 %v259_v60, %v272_v6 }
 0x261   :  { %v274_v8 = vmul.f32 1.442695, %v273_v7 }
 0x263   :  { %348 = vpow2.f32 %v274_v8 }
 0x26d   :  { %v349_v9 = vpop.eup %348 }
 0x26e   :  { %v276_v10 = vsel %vm265_vm5, %v349_v9, 0.0 }
 0x26f   :  { %v277_v11 = vrot.slane %v276_v10, 4 }
 0x271   :  { %v278_v12 = vadd.f32 %v277_v11, %v276_v10 }
 0x273   :  { %v279_v13 = vrot.slane %v278_v12, 2 }
 0x275   :  { %v280_v14 = vadd.f32 %v279_v13, %v278_v12 }
 0x277   :  { %v281_v15 = vrot.slane %v280_v14, 1 }
 0x279   :  { %v282_v16 = vadd.f32 %v281_v15, %v280_v14 }
 0x27b   :  { %350 = vrcp.f32 %v282_v16 }
 0x285   :  { %v351_v17 = vpop.eup %350 }
 0x286   :  { %v284_v18 = vmul.f32 %v351_v17, %v349_v9 }
 0x288   :  { %v285_v19 = vpack.c.bf16 %v284_v18, %v284_v18 }
 0x28a   :  { %286 = vst [vmem:[%s426_s4] sm:$0x3] %v285_v19 }

</bundles_post_ra>
